<compile_context>
chip_gen: v6e
topology: v6e:2x2x1
jax: 0.10.0
libtpu: 0.0.40
codegen_flags: <defaults>
</compile_context>

<pallas_src>
import functools

import jax
import jax.numpy as jnp
from jax.experimental import pallas as pl
from jax.experimental.pallas import tpu as pltpu

K = 3  # conv kernel size (padding = 1, "same" conv)


def _round_up(x, m):
    return (x + m - 1) // m * m


def _classify_kernel(x_ref, w1_ref, b1_ref, w2_ref, b2_ref, out_ref):
    # x_ref : (Bb, L, Cp)      channel-last, channel-padded input rows
    # w1_ref: (K*Cp, Hp)       packed conv weight (im2col layout)
    # b1_ref: (1, Hp)          conv bias (f32)
    # w2_ref: (Hp, NP)         classifier weight, NCLS padded to NP lanes
    # b2_ref: (1, NP)          classifier bias (f32)
    # out_ref: (Bb, NP)        lane-dense logits tile
    Bb, L, Cp = x_ref.shape
    Hp = w1_ref.shape[1]

    x = x_ref[...].reshape(Bb * L, Cp)                     # (Bb*L, Cp)

    # Build the im2col rows [x[l-1] | x[l] | x[l+1]] in-kernel.  Boundary rows
    # (l == 0 / l == L-1 within each batch element) are zero-masked, which also
    # kills any cross-batch-element leakage from the flattened shift.
    zrow = jnp.zeros((1, Cp), x.dtype)
    x_prev_raw = jnp.concatenate([zrow, x[:-1, :]], axis=0)   # row i -> x[i-1]
    x_next_raw = jnp.concatenate([x[1:, :], zrow], axis=0)    # row i -> x[i+1]
    pos = jax.lax.broadcasted_iota(jnp.int32, (Bb, L, Cp), 1).reshape(Bb * L, Cp)
    x_prev = jnp.where(pos == 0, 0.0, x_prev_raw)
    x_next = jnp.where(pos == L - 1, 0.0, x_next_raw)
    im2col = jnp.concatenate([x_prev, x, x_next], axis=1)     # (Bb*L, K*Cp)

    # Single fused conv matmul (MXU), bias + ReLU (VPU).
    h = jnp.dot(im2col, w1_ref[...], preferred_element_type=jnp.float32)
    h = jnp.maximum(h + b1_ref[...], 0.0)                     # (Bb*L, Hp)

    # Global average pool folded into sum * (1/L) (XLU reduce + const scale).
    pooled = h.reshape(Bb, L, Hp).sum(axis=1) * (1.0 / L)     # (Bb, Hp)

    logits = jnp.dot(pooled.astype(w2_ref.dtype), w2_ref[...],
                     preferred_element_type=jnp.float32) + b2_ref[...]
    out_ref[...] = logits.astype(out_ref.dtype)               # full lane-dense tile


def energy_infonce_forward(x_ncw, params, num_blocks=1, use_bf16=False):
    """Equivalent of Energy_InfoNCE.forward: eval-mode classify(x).

    num_blocks: grid size (batch is split into num_blocks chunks).  1 is best
    on v5e/v6e (single TensorCore); use 2 on v7x to engage both TensorCores.
    use_bf16: cast MXU operands to bf16 (f32 accumulation) — mainly for v5e.
    """
    w1, b1, w2, b2 = params                   # (K, C, H), (H,), (H, N), (N,)
    B, C, L = x_ncw.shape
    _, _, H = w1.shape
    NCLS = w2.shape[1]

    Cp = _round_up(C, 8)
    Hp = _round_up(H, 128)
    NP = _round_up(NCLS, 128)
    assert B % num_blocks == 0
    Bb = B // num_blocks

    op_dtype = jnp.bfloat16 if use_bf16 else jnp.float32

    # One-time weight packing into (8,128)-friendly, im2col-ordered layouts.
    w1p = jnp.pad(w1.astype(jnp.float32),
                  ((0, 0), (0, Cp - C), (0, Hp - H))).reshape(K * Cp, Hp)
    b1p = jnp.pad(b1.astype(jnp.float32), (0, Hp - H)).reshape(1, Hp)
    w2p = jnp.pad(w2.astype(jnp.float32), ((0, Hp - H), (0, NP - NCLS)))
    b2p = jnp.pad(b2.astype(jnp.float32), (0, NP - NCLS)).reshape(1, NP)

    # Channel-last, channel-padded input; no length padding (boundaries are
    # handled inside the kernel).
    x = jnp.pad(jnp.transpose(x_ncw.astype(jnp.float32), (0, 2, 1)),
                ((0, 0), (0, 0), (0, Cp - C)))                # (B, L, Cp)

    x = x.astype(op_dtype)
    w1p = w1p.astype(op_dtype)
    w2p = w2p.astype(op_dtype)

    itemsize = jnp.dtype(op_dtype).itemsize
    flops = 2 * B * L * (K * Cp) * Hp + 2 * B * Hp * NP
    bytes_accessed = ((x.size + w1p.size + w2p.size) * itemsize
                      + (b1p.size + b2p.size + B * NP) * 4)

    out = pl.pallas_call(
        _classify_kernel,
        out_shape=jax.ShapeDtypeStruct((B, NP), jnp.float32),
        grid=(num_blocks,),
        in_specs=[
            pl.BlockSpec((Bb, L, Cp), lambda g: (g, 0, 0)),
            pl.BlockSpec((K * Cp, Hp), lambda g: (0, 0)),
            pl.BlockSpec((1, Hp), lambda g: (0, 0)),
            pl.BlockSpec((Hp, NP), lambda g: (0, 0)),
            pl.BlockSpec((1, NP), lambda g: (0, 0)),
        ],
        out_specs=pl.BlockSpec((Bb, NP), lambda g: (g, 0)),
        compiler_params=pltpu.CompilerParams(
            dimension_semantics=("parallel",)),
        cost_estimate=pl.CostEstimate(
            flops=flops, transcendentals=0, bytes_accessed=bytes_accessed),
    )(x, w1p, b1p, w2p, b2p)

    return out[:, :NCLS]                                      # (B, NCLS)


def init_params(key, n_ch, hidden, n_classes):
    """Synthetic backbone params in 'natural' layout: conv (K, C, H), biases 1-D."""
    k1, k2, k3, k4 = jax.random.split(key, 4)
    w1 = jax.random.normal(k1, (K, n_ch, hidden), jnp.float32) * 0.1
    b1 = jax.random.normal(k2, (hidden,), jnp.float32) * 0.01
    w2 = jax.random.normal(k3, (hidden, n_classes), jnp.float32) * 0.1
    b2 = jax.random.normal(k4, (n_classes,), jnp.float32) * 0.01
    return (w1, b1, w2, b2)


def _reference_forward(x_ncw, params):
    """Plain-JAX reference of the same backbone (for a sanity check)."""
    w1, b1, w2, b2 = params
    x = jnp.transpose(x_ncw.astype(jnp.float32), (0, 2, 1))   # (B, L, C)
    pad = (K - 1) // 2
    xp = jnp.pad(x, ((0, 0), (pad, pad), (0, 0)))
    L = x.shape[1]
    acc = sum(jnp.einsum('blc,ch->blh', xp[:, k:k + L, :], w1[k])
              for k in range(K))
    h = jnp.maximum(acc + b1[None, None, :], 0.0)
    pooled = h.mean(axis=1)                                   # (B, H)
    return pooled @ w2 + b2[None, :]


if __name__ == "__main__":
    # Small shapes consistent with the module's 1-D convention:
    # batch=2, n_ch=3, im_sz=32 (1-D length), hidden=32, n_classes=7.
    B, C, L, H, NCLS = 2, 3, 32, 32, 7

    key = jax.random.PRNGKey(0)
    kx, kp = jax.random.split(key)
    x = jax.random.uniform(kx, (B, C, L), jnp.float32, minval=-1.0, maxval=1.0)
    params = init_params(kp, C, H, NCLS)

    fwd = jax.jit(functools.partial(energy_infonce_forward,
                                    num_blocks=1, use_bf16=False))
    logits = jax.block_until_ready(fwd(x, params))
    ref = jax.block_until_ready(_reference_forward(x, params))

    assert logits.shape == (B, NCLS)
    assert jnp.allclose(logits, ref, atol=1e-3, rtol=1e-3)
    # TODO(synk): `adapt` (SGLD sampling, HSSC/InfoNCE loss, optimizer step) is
    # training-time logic with data-dependent Python control flow, not part of
    # forward(); it is not implemented as a kernel.
    print("KERNEL_OK")
</pallas_src>

<mosaic_0001>
module attributes {stable_mosaic.version = 11 : i64} {
  func.func @_classify_kernel(%arg0: i32, %arg1: memref<2x32x8xf32, #tpu.memory_space<vmem>>, %arg2: memref<24x128xf32, #tpu.memory_space<vmem>>, %arg3: memref<1x128xf32, #tpu.memory_space<vmem>>, %arg4: memref<128x128xf32, #tpu.memory_space<vmem>>, %arg5: memref<1x128xf32, #tpu.memory_space<vmem>>, %arg6: memref<2x128xf32, #tpu.memory_space<vmem>>) attributes {dimension_semantics = [#tpu.dimension_semantics<parallel>], iteration_bounds = array<i64: 1>, scalar_prefetch = 0 : i64, scratch_operands = 0 : i64, tpu.core_type = #tpu.core_type<tc>, window_params = [{transform_indices = @transform_0, window_bounds = array<i64: 2, 32, 8>}, {pipeline_mode = #tpu.pipeline_mode<synchronous>, transform_indices = @transform_1, window_bounds = array<i64: 24, 128>}, {pipeline_mode = #tpu.pipeline_mode<synchronous>, transform_indices = @transform_2, window_bounds = array<i64: 1, 128>}, {pipeline_mode = #tpu.pipeline_mode<synchronous>, transform_indices = @transform_3, window_bounds = array<i64: 128, 128>}, {pipeline_mode = #tpu.pipeline_mode<synchronous>, transform_indices = @transform_4, window_bounds = array<i64: 1, 128>}, {transform_indices = @transform_5, window_bounds = array<i64: 2, 128>}]} {
    %c0 = arith.constant 0 : index
    %c0_0 = arith.constant 0 : index
    %c0_1 = arith.constant 0 : index
    %0 = vector.load %arg1[%c0, %c0_0, %c0_1] : memref<2x32x8xf32, #tpu.memory_space<vmem>>, vector<2x32x8xf32>
    %1 = vector.shape_cast %0 : vector<2x32x8xf32> to vector<64x8xf32>
    %cst = arith.constant 0.000000e+00 : f32
    %2 = vector.broadcast %cst : f32 to vector<1x8xf32>
    %3 = vector.extract_strided_slice %1 {offsets = [0, 0], sizes = [63, 8], strides = [1, 1]} : vector<64x8xf32> to vector<63x8xf32>
    %4 = tpu.concatenate %2, %3 in 0 : vector<1x8xf32>, vector<63x8xf32> -> vector<64x8xf32>
    %5 = vector.extract_strided_slice %1 {offsets = [1, 0], sizes = [63, 8], strides = [1, 1]} : vector<64x8xf32> to vector<63x8xf32>
    %6 = tpu.concatenate %5, %2 in 0 : vector<63x8xf32>, vector<1x8xf32> -> vector<64x8xf32>
    %7 = tpu.iota {dimensions = array<i32: 1>} : vector<2x32x8xi32>
    %8 = vector.shape_cast %7 : vector<2x32x8xi32> to vector<64x8xi32>
    %c0_i32 = arith.constant 0 : i32
    %9 = vector.broadcast %c0_i32 : i32 to vector<64x8xi32>
    %10 = arith.cmpi eq, %8, %9 : vector<64x8xi32>
    %cst_2 = arith.constant 0.000000e+00 : f32
    %11 = vector.broadcast %cst_2 : f32 to vector<64x8xf32>
    %12 = arith.select %10, %11, %4 : vector<64x8xi1>, vector<64x8xf32>
    %c31_i32 = arith.constant 31 : i32
    %13 = vector.broadcast %c31_i32 : i32 to vector<64x8xi32>
    %14 = arith.cmpi eq, %8, %13 : vector<64x8xi32>
    %cst_3 = arith.constant 0.000000e+00 : f32
    %15 = vector.broadcast %cst_3 : f32 to vector<64x8xf32>
    %16 = arith.select %14, %15, %6 : vector<64x8xi1>, vector<64x8xf32>
    %17 = tpu.concatenate %12, %1, %16 in 1 : vector<64x8xf32>, vector<64x8xf32>, vector<64x8xf32> -> vector<64x24xf32>
    %c0_4 = arith.constant 0 : index
    %c0_5 = arith.constant 0 : index
    %18 = vector.load %arg2[%c0_4, %c0_5] : memref<24x128xf32, #tpu.memory_space<vmem>>, vector<24x128xf32>
    %cst_6 = arith.constant dense<0.000000e+00> : vector<64x128xf32>
    %19 = tpu.matmul %17, %18, %cst_6 {dimension_numbers = #tpu.dot_dimension_numbers<[1], [0], [0], [1], [0, 0, 1, 1], [], []>} : vector<64x24xf32>, vector<24x128xf32>, vector<64x128xf32> -> vector<64x128xf32>
    %c0_7 = arith.constant 0 : index
    %c0_8 = arith.constant 0 : index
    %20 = vector.load %arg3[%c0_7, %c0_8] : memref<1x128xf32, #tpu.memory_space<vmem>>, vector<1x128xf32>
    %21 = vector.broadcast %20 : vector<1x128xf32> to vector<64x128xf32>
    %22 = arith.addf %19, %21 : vector<64x128xf32>
    %cst_9 = arith.constant 0.000000e+00 : f32
    %23 = vector.broadcast %cst_9 : f32 to vector<64x128xf32>
    %24 = arith.maximumf %22, %23 : vector<64x128xf32>
    %25 = vector.shape_cast %24 : vector<64x128xf32> to vector<2x32x128xf32>
    %cst_10 = arith.constant dense<0.000000e+00> : vector<2x128xf32>
    %26 = vector.multi_reduction <add>, %25, %cst_10 [1] : vector<2x32x128xf32> to vector<2x128xf32>
    %cst_11 = arith.constant 3.125000e-02 : f32
    %27 = vector.broadcast %cst_11 : f32 to vector<2x128xf32>
    %28 = arith.mulf %26, %27 : vector<2x128xf32>
    %c0_12 = arith.constant 0 : index
    %c0_13 = arith.constant 0 : index
    %29 = vector.load %arg4[%c0_12, %c0_13] : memref<128x128xf32, #tpu.memory_space<vmem>>, vector<128x128xf32>
    %cst_14 = arith.constant dense<0.000000e+00> : vector<2x128xf32>
    %30 = tpu.matmul %28, %29, %cst_14 {dimension_numbers = #tpu.dot_dimension_numbers<[1], [0], [0], [1], [0, 0, 1, 1], [], []>} : vector<2x128xf32>, vector<128x128xf32>, vector<2x128xf32> -> vector<2x128xf32>
    %c0_15 = arith.constant 0 : index
    %c0_16 = arith.constant 0 : index
    %31 = vector.load %arg5[%c0_15, %c0_16] : memref<1x128xf32, #tpu.memory_space<vmem>>, vector<1x128xf32>
    %32 = vector.broadcast %31 : vector<1x128xf32> to vector<2x128xf32>
    %33 = arith.addf %30, %32 : vector<2x128xf32>
    %c0_17 = arith.constant 0 : index
    %c0_18 = arith.constant 0 : index
    %34 = vector.load %arg6[%c0_17, %c0_18] : memref<2x128xf32, #tpu.memory_space<vmem>>, vector<2x128xf32>
    tpu.vector_store %arg6[%c0_17, %c0_18], %33 {strides = array<i32>} : memref<2x128xf32, #tpu.memory_space<vmem>>, vector<2x128xf32>,
    return
  }
  func.func @transform_0(%arg0: i32) -> (i32, i32, i32) {
    %c0_i32 = arith.constant 0 : i32
    %c0_i32_0 = arith.constant 0 : i32
    %c0_i32_1 = arith.constant 0 : i32
    return %arg0, %c0_i32, %c0_i32_0 : i32, i32, i32
  }
  func.func @transform_1(%arg0: i32) -> (i32, i32) {
    %c0_i32 = arith.constant 0 : i32
    %c0_i32_0 = arith.constant 0 : i32
    %c0_i32_1 = arith.constant 0 : i32
    return %c0_i32, %c0_i32_0 : i32, i32
  }
  func.func @transform_2(%arg0: i32) -> (i32, i32) {
    %c0_i32 = arith.constant 0 : i32
    %c0_i32_0 = arith.constant 0 : i32
    %c0_i32_1 = arith.constant 0 : i32
    return %c0_i32, %c0_i32_0 : i32, i32
  }
  func.func @transform_3(%arg0: i32) -> (i32, i32) {
    %c0_i32 = arith.constant 0 : i32
    %c0_i32_0 = arith.constant 0 : i32
    %c0_i32_1 = arith.constant 0 : i32
    return %c0_i32, %c0_i32_0 : i32, i32
  }
  func.func @transform_4(%arg0: i32) -> (i32, i32) {
    %c0_i32 = arith.constant 0 : i32
    %c0_i32_0 = arith.constant 0 : i32
    %c0_i32_1 = arith.constant 0 : i32
    return %c0_i32, %c0_i32_0 : i32, i32
  }
  func.func @transform_5(%arg0: i32) -> (i32, i32) {
    %c0_i32 = arith.constant 0 : i32
    %c0_i32_0 = arith.constant 0 : i32
    return %arg0, %c0_i32 : i32, i32
  }
}

</mosaic_0001>

<bundles_post_ra>
// kernel: energy_infonce_forward.1
= control target key start
LH: loop header
LB: loop body
LE: loop exit
PB: predicated region body
PF: predicated region fallthrough
CT: control target
= control target key end

     0   :  { %vm62_vm0 = vcmask 1046528   ;;  %v87_v3 = vlaneseq  ;;  %s589_s24 = smov 8   ;;  %s590_s8 = smov 16   ;;  %s774_s0 = inlined_call_operand.vmem [shape: f32[2,32,8], index: 0, kind: input, shape index: {}]   ;;  %s775_s1 = inlined_call_operand.vmem [shape: f32[24,128], index: 1, kind: input, shape index: {}]   ;;  %s776_s2 = inlined_call_operand.vmem [shape: f32[1,128], index: 2, kind: input, shape index: {}]   ;;  %s777_s3 = inlined_call_operand.vmem [shape: f32[128,128], index: 3, kind: input, shape index: {}]   ;;  %s778_s4 = inlined_call_operand.vmem [shape: f32[1,128], index: 4, kind: input, shape index: {}]   ;;  %s779_s5 = inlined_call_operand.hbm [shape: f32[2,128], index: 5, kind: output, shape index: {}]  }
   0x1   :  { %v21_v0 = vld [vmem:[%s774_s0] sm:$0xff]  ;;  %v22_v1 = vld [vmem:[%s774_s0 + $0x8] sm:$0xff]  ;;  %v23_v2 = vld [vmem:[%s774_s0 + $0x10] sm:$0xff] }
   0x2   :  { %116 = vrot.lane.b32.xlu0 %v21_v0, %s589_s24  ;;  %v63_v4 = vrot.slane %v21_v0, 1  ;;  %v64_v5 = vrot.slane %v22_v1, 1  ;;  %v66_v6 = vrot.slane %v23_v2, 1  ;;  %v24_v7 = vld [vmem:[%s774_s0 + $0x18] sm:$0xff]  ;;  %v88_v8 = vshrl.u32 %v87_v3, 7  ;;  %v25_v11 = vld [vmem:[%s774_s0 + $0x20] sm:$0xff] }
   0x3   :  { %v38_v9 = vrot.slane %v21_v0, 7  ;;  %v192_v12 = vld [vmem:[%s775_s1 + $0x10] sm:$0xff]  ;;  %v191_v13 = vld [vmem:[%s775_s1 + $0x8] sm:$0xff] }
   0x4   :  { %v65_v10 = vsel %vm62_vm0, %v63_v4, %v64_v5  ;;  %509 = vmatprep.subr.mxu0 %v192_v12 }
   0x5   :  { %148 = vrot.lane.b32.xlu1 %v65_v10, %s590_s8 }
   0x6   :  { %10 = vsyncpa [#allocation3], 0  ;;  %118 = vrot.lane.b32.xlu0 %v22_v1, %s589_s24  ;;  %v67_v14 = vsel %vm62_vm0, %v64_v5, %v66_v6  ;;  %v68_v15 = vrot.slane %v24_v7, 1  ;;  %vm37_vm1 = vcmask 1040384   ;;  %510 = vmatpush3.msra.mxu0 %v192_v12  ;;  %v190_v16 = vld [vmem:[%s775_s1] sm:$0xff]  ;;  %v70_v17 = vrot.slane %v25_v11, 1 }
   0x7   :  { %v91_v18 = vadd.s32 24, %v88_v8  ;;  %v26_v19 = vld [vmem:[%s774_s0 + $0x28] sm:$0xff]  ;;  %vm92_vm2 = vcmp.eq.s32.totalorder %v88_v8, 0  ;;  %511 = vmatprep.subr.mxu0 %v191_v13  ;;  %v43_v20 = vrot.slane %v24_v7, 7  ;;  %v61_v22 = vsel %vm37_vm1, 0.0, %v38_v9  ;;  %v28_v26 = vld [vmem:[%s774_s0 + $0x38] sm:$0xff] }
   0x8   :  { %v47_v21 = vrot.slane %v26_v19, 7  ;;  %512 = vmatpush3.msra.mxu0 %v191_v13  ;;  %v96_v23 = vsel %vm92_vm2, 0.0, %v61_v22  ;;  %v39_v24 = vrot.slane %v22_v1, 7  ;;  %v69_v25 = vsel %vm62_vm0, %v66_v6, %v68_v15  ;;  %v27_v32 = vld [vmem:[%s774_s0 + $0x30] sm:$0xff]  ;;  %v370_v22 = vld [vmem:[%s777_s3 + $0x60] sm:$0xff]  ;;  %s593_s22 = smov [#allocation2]  }
   0x9   :  { %150 = vrot.lane.b32.xlu1 %v67_v14, %s590_s8  ;;  %513 = vmatprep.subr.mxu0 %v190_v16  ;;  %v41_v27 = vrot.slane %v23_v2, 7  ;;  %v45_v28 = vrot.slane %v25_v11, 7  ;;  %v71_v29 = vsel %vm62_vm0, %v68_v15, %v70_v17  ;;  %vm107_vm3 = vcmp.eq.s32.totalorder %v91_v18, 31  ;;  %s463_s23 = sshll.u32 %s593_s22, 4  ;;  %s464_s23 = int_to_ptr.vmem [resolvable:$true] %s463_s23 }
   0xa   :  { %120 = vrot.lane.b32.xlu0 %v23_v2, %s589_s24  ;;  %514 = vmatpush3.msra.mxu0 %v190_v16  ;;  %v51_v30 = vrot.slane %v28_v26, 7  ;;  %v40_v31 = vsel %vm37_vm1, %v38_v9, %v39_v24  ;;  %v49_v38 = vrot.slane %v27_v32, 7  ;;  %v111_v39 = vsel %vm107_vm3, 0.0, %v71_v29  ;;  %v363_v29 = vld [vmem:[%s777_s3 + $0x28] sm:$0xff]  ;;  %p572_p1 = scmp.lt.s32.totalorder %s464_s23, %s464_s23 }
   0xb   :  { %v42_v33 = vsel %vm37_vm1, %v39_v24, %v41_v27  ;;  %v44_v34 = vsel %vm37_vm1, %v41_v27, %v43_v20  ;;  %v46_v35 = vsel %vm37_vm1, %v43_v20, %v45_v28  ;;  %v48_v36 = vsel %vm37_vm1, %v45_v28, %v47_v21  ;;  %v372_v20 = vld [vmem:[%s777_s3 + $0x70] sm:$0xff]  ;;  %v365_v27 = vld [vmem:[%s777_s3 + $0x38] sm:$0xff] }
   0xc   :  { %v100_v37 = vsel %vm92_vm2, 0.0, %v46_v35  ;;  %v72_v40 = vrot.slane %v26_v19, 1  ;;  %v50_v41 = vsel %vm37_vm1, %v47_v21, %v49_v38  ;;  %v52_v42 = vsel %vm37_vm1, %v49_v38, %v51_v30  ;;  %v371_v21 = vld [vmem:[%s777_s3 + $0x68] sm:$0xff]  ;;  %v368_v24 = vld [vmem:[%s777_s3 + $0x50] sm:$0xff]  ;;  %v362_v30 = vld [vmem:[%s777_s3 + $0x20] sm:$0xff] }
   0xd   :  { %122 = vrot.lane.b32.xlu1 %v24_v7, %s589_s24  ;;  %v74_v43 = vrot.slane %v27_v32, 1  ;;  %v76_v46 = vrot.slane %v28_v26, 1  ;;  %vm172_vm4 = vcmask 64512   ;;  %vm181_vm5 = vcmask 130048   ;;  %v364_v28 = vld [vmem:[%s777_s3 + $0x30] sm:$0xff] }
   0xe   :  { %152 = vrot.lane.b32.xlu0 %v69_v25, %s590_s8  ;;  %v73_v44 = vsel %vm62_vm0, %v70_v17, %v72_v40  ;;  %vm200_vm6 = vcmask 195584   ;;  %v591_v18 = vmov 0.0   ;;  %v367_v25 = vld [vmem:[%s777_s3 + $0x48] sm:$0xff]  ;;  %vm592_vm7 = vmmov 0  }
   0xf   :  { %v75_v45 = vsel %vm62_vm0, %v72_v40, %v74_v43  ;;  %v77_v47 = vsel %vm62_vm0, %v74_v43, %v76_v46  ;;  %v86_v48 = vsel %vm62_vm0, %v76_v46, 0.0  ;;  %527 = vmatprep.subr.mxu1 %v591_v18  ;;  %559 = vmatprep.mubr.msk.f32.mxu1 %vm592_vm7, %v591_v18  ;;  %vm383_vm8 = vcmask 1041409  }
  0x10   :  { %v115_v49 = vsel %vm107_vm3, 0.0, %v86_v48 }
  0x11   :  { %154 = vrot.lane.b32.xlu1 %v111_v39, %s590_s8 }
  0x12   :  { %124 = vrot.lane.b32.xlu0 %v25_v11, %s589_s24 }
  0x15   :  { %126 = vrot.lane.b32.xlu1 %v26_v19, %s589_s24  ;;  %v373_v19 = vld [vmem:[%s777_s3 + $0x78] sm:$0xff] }
  0x16   :  { %156 = vrot.lane.b32.xlu0 %v73_v44, %s590_s8  ;;  %528 = vmatpush3.msra.mxu1 %v373_v19 }
  0x17   :  { %529 = vmatprep.subr.mxu1 %v591_v18 }
  0x18   :  { %530 = vmatpush3.msra.mxu1 %v372_v20 }
  0x19   :  { %158 = vrot.lane.b32.xlu1 %v75_v45, %s590_s8  ;;  %531 = vmatprep.subr.mxu1 %v591_v18 }
  0x1a   :  { %128 = vrot.lane.b32.xlu0 %v27_v32, %s589_s24  ;;  %532 = vmatpush3.msra.mxu1 %v371_v21  ;;  %v360_v32 = vld [vmem:[%s777_s3 + $0x10] sm:$0xff] }
  0x1b   :  { %533 = vmatprep.subr.mxu1 %v591_v18 }
  0x1c   :  { %534 = vmatpush3.msra.mxu1 %v370_v22 }
  0x1d   :  { %130 = vrot.lane.b32.xlu1 %v28_v26, %s589_s24  ;;  %535 = vmatprep.subr.mxu1 %v591_v18  ;;  %v366_v26 = vld [vmem:[%s777_s3 + $0x40] sm:$0xff]  ;;  %s567_s24 = scalar_lea.vmem %s464_s23, 32 }
  0x1e   :  { %160 = vrot.lane.b32.xlu0 %v77_v47, %s590_s8  ;;  %p568_p0 = scmp.ne.s32.totalorder %s464_s23, %s567_s24  ;;  %p573_p2 = scmp.lt.s32.totalorder %s567_s24, %s567_s24 }
  0x20   :  { %p574_p3 = por %p573_p2, %p572_p1 }
  0x21   :  { %162 = vrot.lane.b32.xlu1 %v115_v49, %s590_s8 }
  0x22   :  { %p575_p4 = pnand %p574_p3, %p568_p0 }
  0x74   :  { %v117_v50 = vpop.permute.xlu0 %116 }
  0x75   :  { %v173_v51 = vsel %vm172_vm4, %v96_v23, %v117_v50  ;;  %v369_v23 = vld [vmem:[%s777_s3 + $0x58] sm:$0xff] }
  0x76   :  { %536 = vmatpush3.msra.mxu1 %v369_v23 }
  0x77   :  { %v149_v52 = vpop.permute.xlu1 %148  ;;  %537 = vmatprep.subr.mxu1 %v591_v18 }
  0x78   :  { %v119_v53 = vpop.permute.xlu0 %118  ;;  %v182_v54 = vsel %vm181_vm5, %v173_v51, %v149_v52  ;;  %538 = vmatpush3.msra.mxu1 %v368_v24 }
  0x79   :  { %v174_v55 = vsel %vm172_vm4, %v40_v31, %v119_v53  ;;  %515 = vmatprep.mubr.msk.f32.mxu0 %vm200_vm6, %v182_v54  ;;  %539 = vmatprep.subr.mxu1 %v591_v18  ;;  %v361_v31 = vld [vmem:[%s777_s3 + $0x18] sm:$0xff] }
  0x7a   :  { %540 = vmatpush3.msra.mxu1 %v367_v25 }
  0x7b   :  { %v151_v56 = vpop.permute.xlu1 %150  ;;  %541 = vmatprep.subr.mxu1 %v591_v18 }
  0x7c   :  { %v183_v57 = vsel %vm181_vm5, %v174_v55, %v151_v56  ;;  %v121_v58 = vpop.permute.xlu0 %120  ;;  %542 = vmatpush3.msra.mxu1 %v366_v26 }
  0x7d   :  { %516 = vmatmul.mubr.msk.f32.vlgmr.msra.gmra.mxu0 %vm200_vm6, %v183_v57  ;;  %v175_v59 = vsel %vm172_vm4, %v42_v33, %v121_v58  ;;  %543 = vmatprep.subr.mxu1 %v591_v18  ;;  %v359_v33 = vld [vmem:[%s777_s3 + $0x8] sm:$0xff] }
  0x7e   :  { %544 = vmatpush3.msra.mxu1 %v365_v27 }
  0x7f   :  { %v123_v60 = vpop.permute.xlu1 %122  ;;  %545 = vmatprep.subr.mxu1 %v591_v18 }
  0x80   :  { %v153_v61 = vpop.permute.xlu0 %152  ;;  %v176_v63 = vsel %vm172_vm4, %v44_v34, %v123_v60  ;;  %546 = vmatpush3.msra.mxu1 %v364_v28  ;;  %v358_v34 = vld [vmem:[%s777_s3] sm:$0xff] }
  0x81   :  { %v184_v62 = vsel %vm181_vm5, %v175_v59, %v153_v61  ;;  %547 = vmatprep.subr.mxu1 %v591_v18 }
  0x82   :  { %518 = vmatprep.mubr.msk.f32.mxu0 %vm200_vm6, %v184_v62  ;;  %548 = vmatpush3.msra.mxu1 %v363_v29 }
  0x83   :  { %v155_v0 = vpop.permute.xlu1 %154  ;;  %549 = vmatprep.subr.mxu1 %v591_v18 }
  0x84   :  { %v185_v1 = vsel %vm181_vm5, %v176_v63, %v155_v0  ;;  %v125_v2 = vpop.permute.xlu0 %124  ;;  %550 = vmatpush3.msra.mxu1 %v362_v30 }
  0x85   :  { %519 = vmatmul.mubr.msk.f32.gmra.mxu0 %vm200_vm6, %v185_v1  ;;  %v177_v3 = vsel %vm172_vm4, %v100_v37, %v125_v2  ;;  %551 = vmatprep.subr.mxu1 %v591_v18  ;;  %v471_v37 = vld [vmem:[%s776_s2] ss:$0 sm:$0xff] }
  0x86   :  { %552 = vmatpush3.msra.mxu1 %v361_v31 }
  0x87   :  { %v127_v4 = vpop.permute.xlu1 %126  ;;  %553 = vmatprep.subr.mxu1 %v591_v18 }
  0x88   :  { %v157_v5 = vpop.permute.xlu0 %156  ;;  %v178_v7 = vsel %vm172_vm4, %v48_v36, %v127_v4  ;;  %554 = vmatpush3.msra.mxu1 %v360_v32 }
  0x89   :  { %v186_v6 = vsel %vm181_vm5, %v177_v3, %v157_v5  ;;  %555 = vmatprep.subr.mxu1 %v591_v18 }
  0x8a   :  { %521 = vmatprep.mubr.msk.f32.mxu0 %vm200_vm6, %v186_v6  ;;  %556 = vmatpush3.msra.mxu1 %v359_v33 }
  0x8b   :  { %v159_v8 = vpop.permute.xlu1 %158  ;;  %557 = vmatprep.subr.mxu1 %v591_v18 }
  0x8c   :  { %v187_v9 = vsel %vm181_vm5, %v178_v7, %v159_v8  ;;  %v129_v10 = vpop.permute.xlu0 %128  ;;  %558 = vmatpush3.msra.mxu1 %v358_v34 }
  0x8d   :  { %522 = vmatmul.mubr.msk.f32.gmra.mxu0 %vm200_vm6, %v187_v9  ;;  %v179_v11 = vsel %vm172_vm4, %v50_v41, %v129_v10 }
  0x8f   :  { %v131_v12 = vpop.permute.xlu1 %130 }
  0x90   :  { %v161_v13 = vpop.permute.xlu0 %160  ;;  %v180_v15 = vsel %vm172_vm4, %v52_v42, %v131_v12 }
  0x91   :  { %v188_v14 = vsel %vm181_vm5, %v179_v11, %v161_v13 }
  0x92   :  { %524 = vmatprep.mubr.msk.f32.mxu0 %vm200_vm6, %v188_v14 }
  0x93   :  { %v163_v16 = vpop.permute.xlu1 %162 }
  0x94   :  { %v189_v17 = vsel %vm181_vm5, %v180_v15, %v163_v16 }
  0x95   :  { %525 = vmatmul.mubr.msk.f32.gmra.mxu0 %vm200_vm6, %v189_v17  ;;  %v480_v17 = vld [vmem:[%s778_s4] ss:$0 sm:$0xff] }
 0x13d   :  { %v517_v35 = vpop.f32.mrf.mxu0 }
 0x13e   :  { %v297_v39 = vadd.f32 %v517_v35, %v471_v37 }
 0x13f   :  { %v291_v36 = vpop.f32.mrf.mxu0 }
 0x140   :  { %v292_v38 = vadd.f32 %v471_v37, %v291_v36  ;;  %v331_v43 = vmax.f32 %v297_v39, 0.0 }
 0x142   :  { %v330_v41 = vmax.f32 %v292_v38, 0.0 }
 0x144   :  { %v338_v45 = vadd.f32 %v331_v43, %v330_v41 }
 0x145   :  { %v520_v40 = vpop.f32.mrf.mxu0 }
 0x146   :  { %v307_v46 = vadd.f32 %v520_v40, %v471_v37 }
 0x147   :  { %v301_v42 = vpop.f32.mrf.mxu0 }
 0x148   :  { %v302_v44 = vadd.f32 %v471_v37, %v301_v42  ;;  %v333_v50 = vmax.f32 %v307_v46, 0.0 }
 0x14a   :  { %v332_v47 = vmax.f32 %v302_v44, 0.0 }
 0x14c   :  { %v339_v48 = vadd.f32 %v338_v45, %v332_v47 }
 0x14d   :  { %v523_v49 = vpop.f32.mrf.mxu0 }
 0x14e   :  { %v340_v52 = vadd.f32 %v339_v48, %v333_v50  ;;  %v317_v55 = vadd.f32 %v523_v49, %v471_v37 }
 0x14f   :  { %v311_v51 = vpop.f32.mrf.mxu0 }
 0x150   :  { %v312_v53 = vadd.f32 %v471_v37, %v311_v51  ;;  %v341_v54 = vrot.slane %v340_v52, 4  ;;  %v335_v60 = vmax.f32 %v317_v55, 0.0 }
 0x152   :  { %v334_v57 = vmax.f32 %v312_v53, 0.0  ;;  %v342_v59 = vadd.f32 %v341_v54, %v340_v52 }
 0x154   :  { %v347_v63 = vadd.f32 %v335_v60, %v334_v57  ;;  %v343_v1 = vrot.slane %v342_v59, 2 }
 0x155   :  { %v526_v56 = vpop.f32.mrf.mxu0 }
 0x156   :  { %v327_v61 = vadd.f32 %v526_v56, %v471_v37  ;;  %v344_v6 = vadd.f32 %v343_v1, %v342_v59 }
 0x157   :  { %v321_v58 = vpop.f32.mrf.mxu0 }
 0x158   :  { %v322_v62 = vadd.f32 %v471_v37, %v321_v58  ;;  %v337_v2 = vmax.f32 %v327_v61, 0.0  ;;  %v345_v9 = vrot.slane %v344_v6, 1 }
 0x15a   :  { %v336_v0 = vmax.f32 %v322_v62, 0.0  ;;  %v346_v11 = vadd.f32 %v345_v9, %v344_v6 }
 0x15c   :  { %v348_v3 = vadd.f32 %v347_v63, %v336_v0  ;;  %v356_v14 = vmul.f32 0.03125, %v346_v11 }
 0x15e   :  { %v349_v4 = vadd.f32 %v348_v3, %v337_v2 }
 0x160   :  { %v350_v5 = vrot.slane %v349_v4, 4 }
 0x162   :  { %v351_v7 = vadd.f32 %v350_v5, %v349_v4 }
 0x164   :  { %v352_v8 = vrot.slane %v351_v7, 2 }
 0x166   :  { %v353_v10 = vadd.f32 %v352_v8, %v351_v7 }
 0x168   :  { %v354_v12 = vrot.slane %v353_v10, 1 }
 0x16a   :  { %v355_v13 = vadd.f32 %v354_v12, %v353_v10 }
 0x16c   :  { %v357_v15 = vmul.f32 0.03125, %v355_v13 }
 0x16e   :  { %v384_v16 = vsel %vm383_vm8, %v357_v15, %v356_v14 }
 0x16f   :  { %560 = vmatmul.mubr.f32.vlgmr.msra.gmra.mxu1 %v384_v16 }
 0x22f   :  { %v452_v18 = vpop.f32.mrf.mxu1 }
 0x230   :  { %v453_v19 = vadd.f32 %v480_v17, %v452_v18 }
 0x231   :  { %v561_v20 = vpop.f32.mrf.mxu1 }
 0x232   :  { %456 = vst [vmem:[#allocation2] sm:$0x3] %v453_v19 }
 0x233   :  { %578 = shalt.err (!%p575_p4)
}
 0x234   :  { %466 = dma.vmem_to_hbm [thread:$0]  %s464_s23, 32, %s779_s5, [#allocation3]  }
 0x235   :  { %587 = dma.done.wait [#allocation3], 32  }
 0x236   :  { %588 = vsyncadd [#allocation3], 4294967264 }
 0x237   :  { %470 = vsyncpa [#allocation3], 1 }

</bundles_post_ra>
